<compile_context>
chip_gen: v5e
topology: v5e:2x2
jax: 0.10.0
libtpu: 0.0.40
codegen_flags: <defaults>
</compile_context>

<pallas_src>
import math

import jax
import jax.numpy as jnp
from jax.experimental import pallas as pl
from jax.experimental.pallas import tpu as pltpu


# ---------------------------------------------------------------------------
# VMEM budget / tiling helpers
# ---------------------------------------------------------------------------
def _vmem_capacity_bytes() -> int:
    """Physical VMEM per TensorCore; conservative v7x fallback if unknown."""
    try:
        info = pltpu.get_tpu_info()
        cap = getattr(info, "vmem_capacity_bytes", None)
        if cap:
            return int(cap)
    except Exception:
        pass
    return 64 * 1024 * 1024


def _pick_tile_h(H: int, row_bytes: int, itemsize: int, vmem_cap: int) -> int:
    """Largest h-tile (multiple of the dtype's sublane packing, or full H) such
    that 5 tile-sized VMEM buffers (x & out double-buffered + slab scratch)
    fit comfortably in the per-generation VMEM budget."""
    pack = 8 * max(1, 4 // max(1, itemsize))        # f32 -> 8, bf16 -> 16, int8 -> 32
    budget = min(int(0.6 * vmem_cap), 40 * 1024 * 1024)
    per_tile = max(1, budget // 5)
    if H * row_bytes <= per_tile:
        return H
    max_rows = max(1, per_tile // row_bytes)
    tH = (max_rows // pack) * pack
    if tH < pack:
        # Very wide rows: even `pack` rows overshoot the per-tile target.
        # TODO(synk): add a second (lane) tiling axis over W*D in multiples of
        # 128 for this regime instead of overshooting the target.
        tH = pack
    return min(tH, H)


# ---------------------------------------------------------------------------
# Pallas kernel wrapper: out[b, h, w*D + d] = x[b, h, w*D + d] + eh[h, d] + ew[w, d]
# ---------------------------------------------------------------------------
def pe_add_2d(x_flat, eh, ew, tH: int, *, donate_x: bool = False):
    """x_flat: (B, H, W*D) lane-dense activations; eh: (H, D); ew: (W, D)."""
    B, H, WD = x_flat.shape
    _, D = eh.shape
    W, _ = ew.shape
    assert W * D == WD

    num_h = pl.cdiv(H, tH)
    itemsize = x_flat.dtype.itemsize
    tile_bytes = tH * WD * itemsize
    small_bytes = 2 * (tH * D + W * D) * itemsize
    need = 5 * tile_bytes + small_bytes + (1 << 20)          # + 1 MiB margin
    cap = _vmem_capacity_bytes()
    vmem_limit = int(min(0.75 * cap, max(need, 16 * 1024 * 1024)))

    def kernel(eh_ref, ew_ref, x_ref, o_ref, ehw_ref):
        b = pl.program_id(1)

        # Build the lane-dense (tH, W*D) positional slab once per h-tile; it
        # stays resident in the VMEM scratch across the (inner) batch axis.
        @pl.when(b == 0)
        def _():
            eh_t = eh_ref[...]                                  # (tH, D)
            for w in range(W):                                  # static unroll
                ehw_ref[:, w * D:(w + 1) * D] = eh_t + ew_ref[w:w + 1, :]

        # Pure streaming add — HBM-bandwidth bound; no further micro-opts needed.
        o_ref[...] = x_ref[...] + ehw_ref[...]

    return pl.pallas_call(
        kernel,
        out_shape=jax.ShapeDtypeStruct((B, H, WD), x_flat.dtype),
        grid_spec=pltpu.PrefetchScalarGridSpec(
            num_scalar_prefetch=0,
            # h outer / b inner: the slab scratch is rebuilt only when the
            # h-tile changes (b == 0) and reused for all B batch iterations.
            grid=(num_h, B),
            in_specs=[
                pl.BlockSpec((tH, D), lambda h, b: (h, 0)),             # eh tile
                pl.BlockSpec((W, D), lambda h, b: (0, 0)),              # ew (whole, tiny)
                pl.BlockSpec((None, tH, WD), lambda h, b: (b, h, 0)),   # x
            ],
            out_specs=pl.BlockSpec((None, tH, WD), lambda h, b: (b, h, 0)),
            scratch_shapes=[pltpu.VMEM((tH, WD), x_flat.dtype)],
        ),
        compiler_params=pltpu.CompilerParams(
            # h "parallel" so v7x megacore shards on h only; b stays "arbitrary"
            # both for perf (slab resident across b per core) and correctness of
            # the @pl.when(b == 0) rebuild.
            dimension_semantics=("parallel", "arbitrary"),
            vmem_limit_bytes=vmem_limit,
        ),
        # Optionally reuse x's HBM buffer for the output (pair with
        # donate_argnums at the jit boundary); x is input index 2.
        input_output_aliases=({2: 0} if donate_x else {}),
    )(eh, ew, x_flat)


# ---------------------------------------------------------------------------
# Module-equivalent setup + forward wrapper (cheap glue in plain JAX)
# ---------------------------------------------------------------------------
class PositionalEncodingNdPallas:
    def __init__(self, d_pos: int, max_size: int, d_model: int, dropout: float = 0.1):
        assert d_pos == 2, "this Pallas implementation covers the 2-D positional case"
        self.d_model = d_model
        self.d_pos = d_pos
        den = jnp.exp(
            -jnp.arange(0, d_model, 2 * d_pos, dtype=jnp.float32)
            * (math.log(10000.0) / d_model)
        )
        self.num = int(den.shape[0])
        # Guard against silent clipping (negative postpad in the PyTorch F.pad).
        assert d_model >= d_pos * 2 * self.num, \
            "d_model must be able to hold d_pos disjoint sin/cos slots"
        pos = jnp.arange(0, max_size, dtype=jnp.float32).reshape(max_size, 1)
        pe = jnp.zeros((max_size, 2 * self.num), dtype=jnp.float32)
        pe = pe.at[:, 0::2].set(jnp.sin(pos * den))
        pe = pe.at[:, 1::2].set(jnp.cos(pos * den))
        self.pos_embedding = pe  # (max_size, 2*num)

    def __call__(self, x, pos=None):
        # x: (B, H, W, d_model)
        if pos is None:
            pos = (0,) * self.d_pos
        B, H, W, D = x.shape
        assert D == self.d_model
        two_num = 2 * self.num

        # Tiny per-dimension tables, pre-padded into their d_model slots
        # (H*D + W*D elements of HBM — negligible, unlike the full H*W*D slab).
        eh = jnp.zeros((H, D), dtype=jnp.float32).at[:, 0:two_num].set(
            jax.lax.dynamic_slice(self.pos_embedding, (pos[0], 0), (H, two_num))
        ).astype(x.dtype)
        ew = jnp.zeros((W, D), dtype=jnp.float32).at[:, two_num:2 * two_num].set(
            jax.lax.dynamic_slice(self.pos_embedding, (pos[1], 0), (W, two_num))
        ).astype(x.dtype)

        x_flat = x.reshape(B, H, W * D)
        row_bytes = W * D * x.dtype.itemsize
        tH = _pick_tile_h(H, row_bytes, x.dtype.itemsize, _vmem_capacity_bytes())

        out = pe_add_2d(x_flat, eh, ew, tH)
        # Dropout is identity in eval mode.
        # TODO(synk): training-mode dropout (p=0.1) would need pltpu.prng_* in-kernel.
        return out.reshape(B, H, W, D)


# ---------------------------------------------------------------------------
if __name__ == "__main__":
    d_pos, max_size, d_model = 2, 32, 32
    B, H, W = 2, 16, 16

    key = jax.random.PRNGKey(0)
    x = jax.random.normal(key, (B, H, W, d_model), dtype=jnp.float32)

    module = PositionalEncodingNdPallas(d_pos, max_size, d_model)
    out = module(x, pos=(0, 0))
    out = jax.block_until_ready(out)

    # plain-JAX reference (same math as the PyTorch forward, eval-mode dropout)
    two_num = 2 * module.num
    eh_ref = jnp.pad(module.pos_embedding[0:H, :], ((0, 0), (0, d_model - two_num)))
    ew_ref = jnp.pad(module.pos_embedding[0:W, :],
                     ((0, 0), (two_num, d_model - 2 * two_num)))
    ref = x + eh_ref.reshape(1, H, 1, d_model) + ew_ref.reshape(1, 1, W, d_model)

    assert out.shape == x.shape and out.dtype == x.dtype
    assert jnp.allclose(out, ref, atol=1e-6, rtol=1e-6)
    print("KERNEL_OK")
</pallas_src>

<mosaic_0001>
module attributes {stable_mosaic.version = 11 : i64} {
  func.func @kernel(%arg0: i32, %arg1: i32, %arg2: memref<16x32xf32, #tpu.memory_space<vmem>>, %arg3: memref<16x32xf32, #tpu.memory_space<vmem>>, %arg4: memref<1x16x512xf32, #tpu.memory_space<vmem>>, %arg5: memref<1x16x512xf32, #tpu.memory_space<vmem>>, %arg6: memref<16x512xf32, #tpu.memory_space<vmem>>) attributes {dimension_semantics = [#tpu.dimension_semantics<parallel>, #tpu.dimension_semantics<arbitrary>], iteration_bounds = array<i64: 1, 2>, scalar_prefetch = 0 : i64, scratch_operands = 1 : i64, tpu.core_type = #tpu.core_type<tc>, window_params = [{transform_indices = @transform_0, window_bounds = array<i64: 16, 32>}, {pipeline_mode = #tpu.pipeline_mode<synchronous>, transform_indices = @transform_1, window_bounds = array<i64: 16, 32>}, {transform_indices = @transform_2, window_bounds = array<i64: 1, 16, 512>}, {transform_indices = @transform_3, window_bounds = array<i64: 1, 16, 512>}]} {
    %c0_i32 = arith.constant 0 : i32
    %0 = arith.cmpi eq, %arg1, %c0_i32 : i32
    %1 = arith.extui %0 : i1 to i32
    %c0_i32_0 = arith.constant 0 : i32
    %2 = arith.cmpi ne, %1, %c0_i32_0 : i32
    scf.if %2 {
      %c0_8 = arith.constant 0 : index
      %c0_9 = arith.constant 0 : index
      %10 = vector.load %arg2[%c0_8, %c0_9] : memref<16x32xf32, #tpu.memory_space<vmem>>, vector<16x32xf32>
      %c0_10 = arith.constant 0 : index
      %c0_11 = arith.constant 0 : index
      %11 = vector.load %arg3[%c0_10, %c0_11] : memref<16x32xf32, #tpu.memory_space<vmem>>, vector<1x32xf32>
      %12 = vector.broadcast %11 : vector<1x32xf32> to vector<16x32xf32>
      %13 = arith.addf %10, %12 : vector<16x32xf32>
      %c0_12 = arith.constant 0 : index
      %c0_13 = arith.constant 0 : index
      %14 = vector.load %arg6[%c0_12, %c0_13] : memref<16x512xf32, #tpu.memory_space<vmem>>, vector<16x32xf32>
      tpu.vector_store %arg6[%c0_12, %c0_13], %13 {strides = array<i32>} : memref<16x512xf32, #tpu.memory_space<vmem>>, vector<16x32xf32>,
      %c1 = arith.constant 1 : index
      %c0_14 = arith.constant 0 : index
      %15 = vector.load %arg3[%c1, %c0_14] : memref<16x32xf32, #tpu.memory_space<vmem>>, vector<1x32xf32>
      %16 = vector.broadcast %15 : vector<1x32xf32> to vector<16x32xf32>
      %17 = arith.addf %10, %16 : vector<16x32xf32>
      %c0_15 = arith.constant 0 : index
      %c32 = arith.constant 32 : index
      %18 = vector.load %arg6[%c0_15, %c32] : memref<16x512xf32, #tpu.memory_space<vmem>>, vector<16x32xf32>
      tpu.vector_store %arg6[%c0_15, %c32], %17 {strides = array<i32>} : memref<16x512xf32, #tpu.memory_space<vmem>>, vector<16x32xf32>,
      %c2 = arith.constant 2 : index
      %c0_16 = arith.constant 0 : index
      %19 = vector.load %arg3[%c2, %c0_16] : memref<16x32xf32, #tpu.memory_space<vmem>>, vector<1x32xf32>
      %20 = vector.broadcast %19 : vector<1x32xf32> to vector<16x32xf32>
      %21 = arith.addf %10, %20 : vector<16x32xf32>
      %c0_17 = arith.constant 0 : index
      %c64 = arith.constant 64 : index
      %22 = vector.load %arg6[%c0_17, %c64] : memref<16x512xf32, #tpu.memory_space<vmem>>, vector<16x32xf32>
      tpu.vector_store %arg6[%c0_17, %c64], %21 {strides = array<i32>} : memref<16x512xf32, #tpu.memory_space<vmem>>, vector<16x32xf32>,
      %c3 = arith.constant 3 : index
      %c0_18 = arith.constant 0 : index
      %23 = vector.load %arg3[%c3, %c0_18] : memref<16x32xf32, #tpu.memory_space<vmem>>, vector<1x32xf32>
      %24 = vector.broadcast %23 : vector<1x32xf32> to vector<16x32xf32>
      %25 = arith.addf %10, %24 : vector<16x32xf32>
      %c0_19 = arith.constant 0 : index
      %c96 = arith.constant 96 : index
      %26 = vector.load %arg6[%c0_19, %c96] : memref<16x512xf32, #tpu.memory_space<vmem>>, vector<16x32xf32>
      tpu.vector_store %arg6[%c0_19, %c96], %25 {strides = array<i32>} : memref<16x512xf32, #tpu.memory_space<vmem>>, vector<16x32xf32>,
      %c4 = arith.constant 4 : index
      %c0_20 = arith.constant 0 : index
      %27 = vector.load %arg3[%c4, %c0_20] : memref<16x32xf32, #tpu.memory_space<vmem>>, vector<1x32xf32>
      %28 = vector.broadcast %27 : vector<1x32xf32> to vector<16x32xf32>
      %29 = arith.addf %10, %28 : vector<16x32xf32>
      %c0_21 = arith.constant 0 : index
      %c128 = arith.constant 128 : index
      %30 = vector.load %arg6[%c0_21, %c128] : memref<16x512xf32, #tpu.memory_space<vmem>>, vector<16x32xf32>
      tpu.vector_store %arg6[%c0_21, %c128], %29 {strides = array<i32>} : memref<16x512xf32, #tpu.memory_space<vmem>>, vector<16x32xf32>,
      %c5 = arith.constant 5 : index
      %c0_22 = arith.constant 0 : index
      %31 = vector.load %arg3[%c5, %c0_22] : memref<16x32xf32, #tpu.memory_space<vmem>>, vector<1x32xf32>
      %32 = vector.broadcast %31 : vector<1x32xf32> to vector<16x32xf32>
      %33 = arith.addf %10, %32 : vector<16x32xf32>
      %c0_23 = arith.constant 0 : index
      %c160 = arith.constant 160 : index
      %34 = vector.load %arg6[%c0_23, %c160] : memref<16x512xf32, #tpu.memory_space<vmem>>, vector<16x32xf32>
      tpu.vector_store %arg6[%c0_23, %c160], %33 {strides = array<i32>} : memref<16x512xf32, #tpu.memory_space<vmem>>, vector<16x32xf32>,
      %c6 = arith.constant 6 : index
      %c0_24 = arith.constant 0 : index
      %35 = vector.load %arg3[%c6, %c0_24] : memref<16x32xf32, #tpu.memory_space<vmem>>, vector<1x32xf32>
      %36 = vector.broadcast %35 : vector<1x32xf32> to vector<16x32xf32>
      %37 = arith.addf %10, %36 : vector<16x32xf32>
      %c0_25 = arith.constant 0 : index
      %c192 = arith.constant 192 : index
      %38 = vector.load %arg6[%c0_25, %c192] : memref<16x512xf32, #tpu.memory_space<vmem>>, vector<16x32xf32>
      tpu.vector_store %arg6[%c0_25, %c192], %37 {strides = array<i32>} : memref<16x512xf32, #tpu.memory_space<vmem>>, vector<16x32xf32>,
      %c7 = arith.constant 7 : index
      %c0_26 = arith.constant 0 : index
      %39 = vector.load %arg3[%c7, %c0_26] : memref<16x32xf32, #tpu.memory_space<vmem>>, vector<1x32xf32>
      %40 = vector.broadcast %39 : vector<1x32xf32> to vector<16x32xf32>
      %41 = arith.addf %10, %40 : vector<16x32xf32>
      %c0_27 = arith.constant 0 : index
      %c224 = arith.constant 224 : index
      %42 = vector.load %arg6[%c0_27, %c224] : memref<16x512xf32, #tpu.memory_space<vmem>>, vector<16x32xf32>
      tpu.vector_store %arg6[%c0_27, %c224], %41 {strides = array<i32>} : memref<16x512xf32, #tpu.memory_space<vmem>>, vector<16x32xf32>,
      %c8 = arith.constant 8 : index
      %c0_28 = arith.constant 0 : index
      %43 = vector.load %arg3[%c8, %c0_28] : memref<16x32xf32, #tpu.memory_space<vmem>>, vector<1x32xf32>
      %44 = vector.broadcast %43 : vector<1x32xf32> to vector<16x32xf32>
      %45 = arith.addf %10, %44 : vector<16x32xf32>
      %c0_29 = arith.constant 0 : index
      %c256 = arith.constant 256 : index
      %46 = vector.load %arg6[%c0_29, %c256] : memref<16x512xf32, #tpu.memory_space<vmem>>, vector<16x32xf32>
      tpu.vector_store %arg6[%c0_29, %c256], %45 {strides = array<i32>} : memref<16x512xf32, #tpu.memory_space<vmem>>, vector<16x32xf32>,
      %c9 = arith.constant 9 : index
      %c0_30 = arith.constant 0 : index
      %47 = vector.load %arg3[%c9, %c0_30] : memref<16x32xf32, #tpu.memory_space<vmem>>, vector<1x32xf32>
      %48 = vector.broadcast %47 : vector<1x32xf32> to vector<16x32xf32>
      %49 = arith.addf %10, %48 : vector<16x32xf32>
      %c0_31 = arith.constant 0 : index
      %c288 = arith.constant 288 : index
      %50 = vector.load %arg6[%c0_31, %c288] : memref<16x512xf32, #tpu.memory_space<vmem>>, vector<16x32xf32>
      tpu.vector_store %arg6[%c0_31, %c288], %49 {strides = array<i32>} : memref<16x512xf32, #tpu.memory_space<vmem>>, vector<16x32xf32>,
      %c10 = arith.constant 10 : index
      %c0_32 = arith.constant 0 : index
      %51 = vector.load %arg3[%c10, %c0_32] : memref<16x32xf32, #tpu.memory_space<vmem>>, vector<1x32xf32>
      %52 = vector.broadcast %51 : vector<1x32xf32> to vector<16x32xf32>
      %53 = arith.addf %10, %52 : vector<16x32xf32>
      %c0_33 = arith.constant 0 : index
      %c320 = arith.constant 320 : index
      %54 = vector.load %arg6[%c0_33, %c320] : memref<16x512xf32, #tpu.memory_space<vmem>>, vector<16x32xf32>
      tpu.vector_store %arg6[%c0_33, %c320], %53 {strides = array<i32>} : memref<16x512xf32, #tpu.memory_space<vmem>>, vector<16x32xf32>,
      %c11 = arith.constant 11 : index
      %c0_34 = arith.constant 0 : index
      %55 = vector.load %arg3[%c11, %c0_34] : memref<16x32xf32, #tpu.memory_space<vmem>>, vector<1x32xf32>
      %56 = vector.broadcast %55 : vector<1x32xf32> to vector<16x32xf32>
      %57 = arith.addf %10, %56 : vector<16x32xf32>
      %c0_35 = arith.constant 0 : index
      %c352 = arith.constant 352 : index
      %58 = vector.load %arg6[%c0_35, %c352] : memref<16x512xf32, #tpu.memory_space<vmem>>, vector<16x32xf32>
      tpu.vector_store %arg6[%c0_35, %c352], %57 {strides = array<i32>} : memref<16x512xf32, #tpu.memory_space<vmem>>, vector<16x32xf32>,
      %c12 = arith.constant 12 : index
      %c0_36 = arith.constant 0 : index
      %59 = vector.load %arg3[%c12, %c0_36] : memref<16x32xf32, #tpu.memory_space<vmem>>, vector<1x32xf32>
      %60 = vector.broadcast %59 : vector<1x32xf32> to vector<16x32xf32>
      %61 = arith.addf %10, %60 : vector<16x32xf32>
      %c0_37 = arith.constant 0 : index
      %c384 = arith.constant 384 : index
      %62 = vector.load %arg6[%c0_37, %c384] : memref<16x512xf32, #tpu.memory_space<vmem>>, vector<16x32xf32>
      tpu.vector_store %arg6[%c0_37, %c384], %61 {strides = array<i32>} : memref<16x512xf32, #tpu.memory_space<vmem>>, vector<16x32xf32>,
      %c13 = arith.constant 13 : index
      %c0_38 = arith.constant 0 : index
      %63 = vector.load %arg3[%c13, %c0_38] : memref<16x32xf32, #tpu.memory_space<vmem>>, vector<1x32xf32>
      %64 = vector.broadcast %63 : vector<1x32xf32> to vector<16x32xf32>
      %65 = arith.addf %10, %64 : vector<16x32xf32>
      %c0_39 = arith.constant 0 : index
      %c416 = arith.constant 416 : index
      %66 = vector.load %arg6[%c0_39, %c416] : memref<16x512xf32, #tpu.memory_space<vmem>>, vector<16x32xf32>
      tpu.vector_store %arg6[%c0_39, %c416], %65 {strides = array<i32>} : memref<16x512xf32, #tpu.memory_space<vmem>>, vector<16x32xf32>,
      %c14 = arith.constant 14 : index
      %c0_40 = arith.constant 0 : index
      %67 = vector.load %arg3[%c14, %c0_40] : memref<16x32xf32, #tpu.memory_space<vmem>>, vector<1x32xf32>
      %68 = vector.broadcast %67 : vector<1x32xf32> to vector<16x32xf32>
      %69 = arith.addf %10, %68 : vector<16x32xf32>
      %c0_41 = arith.constant 0 : index
      %c448 = arith.constant 448 : index
      %70 = vector.load %arg6[%c0_41, %c448] : memref<16x512xf32, #tpu.memory_space<vmem>>, vector<16x32xf32>
      tpu.vector_store %arg6[%c0_41, %c448], %69 {strides = array<i32>} : memref<16x512xf32, #tpu.memory_space<vmem>>, vector<16x32xf32>,
      %c15 = arith.constant 15 : index
      %c0_42 = arith.constant 0 : index
      %71 = vector.load %arg3[%c15, %c0_42] : memref<16x32xf32, #tpu.memory_space<vmem>>, vector<1x32xf32>
      %72 = vector.broadcast %71 : vector<1x32xf32> to vector<16x32xf32>
      %73 = arith.addf %10, %72 : vector<16x32xf32>
      %c0_43 = arith.constant 0 : index
      %c480 = arith.constant 480 : index
      %74 = vector.load %arg6[%c0_43, %c480] : memref<16x512xf32, #tpu.memory_space<vmem>>, vector<16x32xf32>
      tpu.vector_store %arg6[%c0_43, %c480], %73 {strides = array<i32>} : memref<16x512xf32, #tpu.memory_space<vmem>>, vector<16x32xf32>,
    } else {
    }
    %c0 = arith.constant 0 : index
    %c0_1 = arith.constant 0 : index
    %c0_2 = arith.constant 0 : index
    %3 = vector.load %arg4[%c0, %c0_1, %c0_2] : memref<1x16x512xf32, #tpu.memory_space<vmem>>, vector<1x16x512xf32>
    %4 = vector.shape_cast %3 : vector<1x16x512xf32> to vector<16x512xf32>
    %c0_3 = arith.constant 0 : index
    %c0_4 = arith.constant 0 : index
    %5 = vector.load %arg6[%c0_3, %c0_4] : memref<16x512xf32, #tpu.memory_space<vmem>>, vector<16x512xf32>
    %6 = arith.addf %4, %5 : vector<16x512xf32>
    %c0_5 = arith.constant 0 : index
    %c0_6 = arith.constant 0 : index
    %c0_7 = arith.constant 0 : index
    %7 = vector.load %arg5[%c0_5, %c0_6, %c0_7] : memref<1x16x512xf32, #tpu.memory_space<vmem>>, vector<1x16x512xf32>
    %8 = vector.shape_cast %7 : vector<1x16x512xf32> to vector<16x512xf32>
    %9 = vector.shape_cast %6 : vector<16x512xf32> to vector<1x16x512xf32>
    tpu.vector_store %arg5[%c0_5, %c0_6, %c0_7], %9 {strides = array<i32>} : memref<1x16x512xf32, #tpu.memory_space<vmem>>, vector<1x16x512xf32>,
    return
  }
  func.func @transform_0(%arg0: i32, %arg1: i32) -> (i32, i32) {
    %c0_i32 = arith.constant 0 : i32
    %c0_i32_0 = arith.constant 0 : i32
    return %arg0, %c0_i32 : i32, i32
  }
  func.func @transform_1(%arg0: i32, %arg1: i32) -> (i32, i32) {
    %c0_i32 = arith.constant 0 : i32
    %c0_i32_0 = arith.constant 0 : i32
    %c0_i32_1 = arith.constant 0 : i32
    return %c0_i32, %c0_i32_0 : i32, i32
  }
  func.func @transform_2(%arg0: i32, %arg1: i32) -> (i32, i32, i32) {
    %c0_i32 = arith.constant 0 : i32
    %c0_i32_0 = arith.constant 0 : i32
    return %arg1, %arg0, %c0_i32 : i32, i32, i32
  }
  func.func @transform_3(%arg0: i32, %arg1: i32) -> (i32, i32, i32) {
    %c0_i32 = arith.constant 0 : i32
    %c0_i32_0 = arith.constant 0 : i32
    return %arg1, %arg0, %c0_i32 : i32, i32, i32
  }
}

</mosaic_0001>

<bundles_post_ra>
// kernel: tpu_custom_call.1
= control target key start
LH: loop header
LB: loop body
LE: loop exit
PB: predicated region body
PF: predicated region fallthrough
CT: control target
= control target key end

     0   :  { %s1225_s0 = inlined_call_operand.hbm [shape: f32[16,32], index: 0, kind: input, shape index: {}]   ;;  %s1226_s1 = inlined_call_operand.hbm [shape: f32[16,32], index: 1, kind: input, shape index: {}]   ;;  %s1227_s2 = inlined_call_operand.hbm [shape: f32[2,16,512], index: 2, kind: input, shape index: {}]   ;;  %s1228_s3 = inlined_call_operand.hbm [shape: f32[2,16,512], index: 3, kind: output, shape index: {}]  }
   0x1   :  { %1229 = sst [smem:[#allocation14_spill]] %s1225_s0 }
   0x2   :  { %8 = vsyncpa [#allocation4], 0 }
   0x3   :  { %9 = vsyncpa [#allocation7], 0 }
   0x4   :  { %10 = vsyncpa [#allocation5], 0 }
   0x5   :  { %12 = vsyncpa [#allocation5 + $0x1], 0  ;;  %s956_s12 = smov 0   ;;  %s958_s13 = smov 0  }
   0x6   :  { %s960_s14 = smov 0   ;;  %s962_s15 = smov 0  }
   0x7   :  { %s964_s16 = smov 0   ;;  %s966_s17 = smov 0  }
   0x8 LB: > { %s987_s18 = sadd.s32 4294967295, %s923_s17   ;;  %s614_s19 = sadd.s32 4294967294, %s923_s17   ;;  %s923_s17 = sphi %s966_s17, %s18_s17   ;;  %s919_s16 = sphi %s964_s16, %s1240_s16   ;;  %s915_s15 = sphi %s962_s15, %s1239_s15   ;;  %s911_s14 = sphi %s960_s14, %s1238_s14   ;;  %s907_s13 = sphi %s958_s13, %s1237_s13   ;;  %s903_s12 = sphi %s956_s12, %s1236_s12  }
   0x9   : > { %p99_p0 = scmp.ne.s32.totalorder %s907_s13, %s903_s12  ;;  %p100_p1 = scmp.eq.s32.totalorder %s987_s18, 0 }
   0xa   : > { %p125_p2 = scmp.eq.s32.totalorder %s987_s18, 1  ;;  %p131_p3 = scmp.eq.s32.totalorder %s614_s19, 1 }
   0xb   : > { %p996_p4 = por %p100_p1, %p99_p0  ;;  %p615_p5 = scmp.ge.s32.totalorder %s923_s17, 1 }
   0xc   : > { %p1001_p6 = por %p131_p3, %p99_p0  ;;  %p138_p7 = scmp.lt.s32.totalorder %s923_s17, 3 }
   0xd   : > { %s1232_s0 = sld [smem:[#allocation14_spill]]  ;;  %s925_s26 = smov [#allocation3]  }
   0xe   : > { %p1009_p8 = pnand %p615_p5, %p138_p7  ;;  %s154_s27 = sshll.u32 %s925_s26, 4  ;;  %s155_s27 = int_to_ptr.vmem [resolvable:$true] %s154_s27 }
   0xf   : > { %p618_p11 = scmp.ge.s32.totalorder %s923_s17, 2  ;;  %s166_s30 = sshll.u32 %s1226_s1, 4  ;;  %s167_s30 = int_to_ptr.hbm [resolvable:$true] %s166_s30 }
  0x10   : > { %p647_p9 = pneg %p1009_p8  ;;  %s926_s4 = smov 128  }
  0x11   : > { %s927_s5 = smov 8   ;;  %s928_s6 = smov [#allocation6]  }
  0x12   : > { %p648_p10 = pnand %p647_p9, %p100_p1  ;;  %s168_s7 = sshll.u32 %s928_s6, 4  ;;  %s169_s7 = int_to_ptr.vmem [resolvable:$true] %s168_s7 }
  0x13   : > { %s152_s24 = sshll.u32 %s1232_s0, 4  ;;  %s27_s8 = sadd.s32 1, %s919_s16  ;;  %s153_s24 = int_to_ptr.hbm [resolvable:$true] %s152_s24 }
  0x14   : > { %650 = dma.hbm_to_vmem [thread:$0]  (!%p648_p10), %s153_s24, 256, %s155_s27, [#allocation4], %s926_s4, %s926_s4, %s927_s5  }
  0x15   : > { %653 = dma.hbm_to_vmem [thread:$0]  (!%p648_p10), %s167_s30, 256, %s169_s7, [#allocation7], %s926_s4, %s926_s4, %s927_s5  }
  0x16   : > { %s86_s9 = sadd.s32 1, %s911_s14  ;;  %p28_p12 = scmp.ge.s32.totalorder %s27_s8, 2 }
  0x17   : > { %p93_p13 = scmp.ne.s32.totalorder %s911_s14, %s907_s13  ;;  %p94_p0 = scmp.eq.s32.totalorder %s923_s17, 0 }
  0x18   : > { %p664_p3 = scmp.lt.s32.totalorder %s923_s17, 2  ;;  %s1242_s8 = smov (%p28_p12, %s27_s8), 0 }
  0x19   : > { %p1029_p5 = por %p94_p0, %p93_p13  ;;  %p1035_p7 = por %p125_p2, %p93_p13 }
  0x1a   : > { %s81_s19 = ssub.s32 %s919_s16, %s1242_s8  ;;  %s182_s22 = sand.u32 1, %s923_s17  }
  0x1b   : > { %p84_p9 = scmp.eq.s32.totalorder %s81_s19, 0  ;;  %s184_s23 = sand.u32 1, %s911_s14  }
  0x1c   : > { %s633_s24 = sshll.u32 %s919_s16, 6  ;;  %s619_s27 = sshll.u32 %s184_s23, 6 }
  0x1d   : > { %s1045_s26 = scalar_select %p84_p9, %s911_s14, %s86_s9  }
  0x1e   : > { %s194_s30 = scalar_lea.hbm %s1227_s2, %s633_s24  ;;  %s186_s5 = scalar_lea.vmem [#allocation8], %s619_s27 }
  0x1f   : > { %s195_s4 = sshll.u32 %s194_s30, 4  ;;  %s197_s6 = sshll.u32 %s186_s5, 4  ;;  %s196_s4 = int_to_ptr.hbm [resolvable:$true] %s195_s4  ;;  %s198_s6 = int_to_ptr.vmem [resolvable:$true] %s197_s6 }
  0x20   : > { %p655_p2 = pnand %p664_p3, %p1029_p5  ;;  %s183_s7 = scalar_lea.sflag [#allocation4], %s182_s22 }
  0x21   : > { %s929_s0 = smov 512   ;;  %s930_s19 = smov 32  }
  0x22   : > { %657 = dma.hbm_to_vmem [thread:$0]  (!%p655_p2), %s196_s4, 1024, %s198_s6, %s183_s7, %s929_s0, %s929_s0, %s930_s19  }
  0x23   : > { %209 = sbr.rel (%p1009_p8) target bundleno = 246 (0xf6), region = 32 }
  0x28   : > { %886 = dma.done.wait (%p100_p1), [#allocation4], 256  }
  0x29   : > { %888 = vsyncadd (%p100_p1), [#allocation4], 4294967040 }
  0x2a   : > { %890 = dma.done.wait (%p100_p1), [#allocation7], 256  }
  0x2b   : > { %892 = vsyncadd (%p100_p1), [#allocation7], 4294967040  ;;  %s221_s0 = sand.u32 1, %s987_s18   ;;  %s223_s9 = sand.u32 1, %s907_s13  }
  0x2c   : > { %s625_s25 = sshll.u32 %s223_s9, 6  ;;  %s222_s10 = scalar_lea.sflag [#allocation4], %s221_s0 }
  0x2d   : > { %s1068_s22 = scalar_lea.vmem [#allocation8], %s625_s25 }
  0x2e   : > { %894 = dma.done.wait (%p996_p4), %s222_s10, 1024  }
  0x2f   : > { %896 = vsyncadd (%p996_p4), %s222_s10, 4294966272  ;;  %s1074_s23 = scalar_lea.vmem [#allocation9], %s625_s25  ;;  %p627_p1 = scmp.ne.s32.totalorder %s915_s15, 0 }
  0x30   : > { %s931_s18 = smov (!%p627_p1), 64   ;;  %s932_s24 = smov (!%p627_p1), 32  }
  0x31   : > { %255 = sbr.rel (%p627_p1) target bundleno = 230 (0xe6), region = 48  ;;  %s933_s20 = smov (!%p627_p1), 96  }
  0x36   : > { %v1077_v0 = vld [vmem:[#allocation3] sm:$0xff]  ;;  %v727_v1 = vld [vmem:[#allocation6 + $0x2] ss:$0 sm:$0xff]  ;;  %v728_v2 = vld [vmem:[#allocation6 + $0x1] ss:$0 sm:$0xff]  ;;  %vm262_vm0 = vcmask 261120  }
  0x37   : > { %v282_v3 = vadd.f32 %v727_v1, %v1077_v0  ;;  %v267_v4 = vadd.f32 %v728_v2, %v1077_v0  ;;  %v730_v5 = vld [vmem:[#allocation6 + $0x3] ss:$0 sm:$0xff]  ;;  %v1083_v6 = vld [vmem:[#allocation3 + $0x8] sm:$0xff]  ;;  %v729_v11 = vld [vmem:[#allocation6 + $0x5] ss:$0 sm:$0xff]  ;;  %vm277_vm1 = vcmask 523520  }
  0x38   : > { %v297_v7 = vadd.f32 %v730_v5, %v1077_v0  ;;  %v283_v8 = vadd.f32 %v727_v1, %v1083_v6  ;;  %v268_v9 = vadd.f32 %v728_v2, %v1083_v6  ;;  %v298_v10 = vadd.f32 %v730_v5, %v1083_v6  ;;  %v732_v14 = vld [vmem:[#allocation6 + $0x6] ss:$0 sm:$0xff]  ;;  %v731_v16 = vld [vmem:[#allocation6 + $0x7] ss:$0 sm:$0xff]  ;;  %v734_v19 = vld [vmem:[#allocation6 + $0x9] ss:$0 sm:$0xff] }
  0x39   : > { %286 = vrot.lane.b32.xlu1 %v282_v3, %s931_s18  ;;  %271 = vrot.lane.b32.xlu0 %v267_v4, %s932_s24  ;;  %v319_v12 = vadd.f32 %v729_v11, %v1083_v6  ;;  %v318_v13 = vadd.f32 %v729_v11, %v1077_v0  ;;  %v332_v15 = vadd.f32 %v732_v14, %v1077_v0  ;;  %v733_v21 = vld [vmem:[#allocation6 + $0xd] ss:$0 sm:$0xff]  ;;  %v735_v25 = vld [vmem:[#allocation6 + $0xa] ss:$0 sm:$0xff]  ;;  %v736_v28 = vld [vmem:[#allocation6 + $0xe] ss:$0 sm:$0xff] }
  0x3a   : > { %301 = vrot.lane.b32.xlu2 %v297_v7, %s933_s20  ;;  %v346_v17 = vadd.f32 %v731_v16, %v1077_v0  ;;  %v333_v18 = vadd.f32 %v732_v14, %v1083_v6  ;;  %v366_v20 = vadd.f32 %v734_v19, %v1077_v0  ;;  %v414_v22 = vadd.f32 %v733_v21, %v1077_v0  ;;  %v738_v32 = vld [vmem:[#allocation6 + $0xb] ss:$0 sm:$0xff]  ;;  %v737_v34 = vld [vmem:[#allocation6 + $0xf] ss:$0 sm:$0xff]  ;;  %v739_v38 = vld [vmem:[#allocation6] ss:$0 sm:$0xff] }
  0x3b   : > { %v367_v23 = vadd.f32 %v734_v19, %v1083_v6  ;;  %v415_v24 = vadd.f32 %v733_v21, %v1083_v6  ;;  %v381_v26 = vadd.f32 %v735_v25, %v1083_v6  ;;  %v380_v27 = vadd.f32 %v735_v25, %v1077_v0  ;;  %v740_v42 = vld [vmem:[#allocation6 + $0x4] ss:$0 sm:$0xff]  ;;  %v741_v46 = vld [vmem:[#allocation6 + $0x8] ss:$0 sm:$0xff]  ;;  %v742_v48 = vld [vmem:[#allocation6 + $0xc] ss:$0 sm:$0xff] }
  0x3c   : > { %v428_v29 = vadd.f32 %v736_v28, %v1077_v0  ;;  %v347_v30 = vadd.f32 %v731_v16, %v1083_v6  ;;  %v429_v31 = vadd.f32 %v736_v28, %v1083_v6  ;;  %v394_v33 = vadd.f32 %v738_v32, %v1077_v0 }
  0x3d   : > { %v442_v35 = vadd.f32 %v737_v34, %v1077_v0  ;;  %v395_v36 = vadd.f32 %v738_v32, %v1083_v6  ;;  %v443_v37 = vadd.f32 %v737_v34, %v1083_v6  ;;  %v260_v39 = vadd.f32 %v739_v38, %v1077_v0 }
  0x3e   : > { %v261_v40 = vadd.f32 %v739_v38, %v1083_v6  ;;  %v313_v43 = vadd.f32 %v740_v42, %v1083_v6  ;;  %v312_v44 = vadd.f32 %v740_v42, %v1077_v0  ;;  %v360_v47 = vadd.f32 %v741_v46, %v1077_v0 }
  0x3f   : > { %263 = vst.msk [vmem:[#allocation2] sm:$0xff] %vm262_vm0, %v260_v39  ;;  %v409_v50 = vadd.f32 %v742_v48, %v1083_v6  ;;  %v408_v51 = vadd.f32 %v742_v48, %v1077_v0  ;;  %v361_v52 = vadd.f32 %v741_v46, %v1083_v6  ;;  %vm292_vm2 = vcmask 785920  }
  0x40   : > { %264 = vst.msk [vmem:[#allocation2 + $0x20] sm:$0xff] %vm262_vm0, %v261_v40  ;;  %vm307_vm3 = vcmask 1048320  }
  0x41   : > { %288 = vrot.lane.b32.xlu1 %v283_v8, %s931_s18  ;;  %273 = vrot.lane.b32.xlu0 %v268_v9, %s932_s24  ;;  %315 = vst.msk [vmem:[#allocation2 + $0x28] sm:$0xff] %vm262_vm0, %v313_v43 }
  0x42   : > { %303 = vrot.lane.b32.xlu2 %v298_v10, %s933_s20  ;;  %314 = vst.msk [vmem:[#allocation2 + $0x8] sm:$0xff] %vm262_vm0, %v312_v44 }
  0x43   : > { %362 = vst.msk [vmem:[#allocation2 + $0x10] sm:$0xff] %vm262_vm0, %v360_v47 }
  0x44   : > { %411 = vst.msk [vmem:[#allocation2 + $0x38] sm:$0xff] %vm262_vm0, %v409_v50 }
  0x45   : > { %410 = vst.msk [vmem:[#allocation2 + $0x18] sm:$0xff] %vm262_vm0, %v408_v51 }
  0x46   : > { %363 = vst.msk [vmem:[#allocation2 + $0x30] sm:$0xff] %vm262_vm0, %v361_v52 }
  0x49   : > { %324 = vrot.lane.b32.xlu1 %v319_v12, %s932_s24  ;;  %322 = vrot.lane.b32.xlu0 %v318_v13, %s932_s24 }
  0x4a   : > { %336 = vrot.lane.b32.xlu2 %v332_v15, %s931_s18 }
  0x51   : > { %350 = vrot.lane.b32.xlu1 %v346_v17, %s933_s20  ;;  %338 = vrot.lane.b32.xlu0 %v333_v18, %s931_s18 }
  0x52   : > { %370 = vrot.lane.b32.xlu2 %v366_v20, %s932_s24 }
  0x59   : > { %418 = vrot.lane.b32.xlu1 %v414_v22, %s932_s24  ;;  %372 = vrot.lane.b32.xlu0 %v367_v23, %s932_s24 }
  0x5a   : > { %420 = vrot.lane.b32.xlu2 %v415_v24, %s932_s24 }
  0x61   : > { %386 = vrot.lane.b32.xlu1 %v381_v26, %s931_s18  ;;  %384 = vrot.lane.b32.xlu0 %v380_v27, %s931_s18 }
  0x62   : > { %432 = vrot.lane.b32.xlu2 %v428_v29, %s931_s18 }
  0x69   : > { %352 = vrot.lane.b32.xlu1 %v347_v30, %s933_s20  ;;  %434 = vrot.lane.b32.xlu0 %v429_v31, %s931_s18 }
  0x6a   : > { %398 = vrot.lane.b32.xlu2 %v394_v33, %s933_s20 }
  0x71   : > { %446 = vrot.lane.b32.xlu1 %v442_v35, %s933_s20  ;;  %400 = vrot.lane.b32.xlu0 %v395_v36, %s933_s20 }
  0x72   : > { %448 = vrot.lane.b32.xlu2 %v443_v37, %s933_s20 }
  0x94   : > { %v302_v41 = vpop.permute.xlu2 %301 }
  0x9c   : > { %v304_v45 = vpop.permute.xlu2 %303 }
  0xa4   : > { %v337_v49 = vpop.permute.xlu2 %336 }
  0xab   : > { %v287_v53 = vpop.permute.xlu1 %286  ;;  %v272_v54 = vpop.permute.xlu0 %271 }
  0xac   : > { %278 = vst.msk [vmem:[#allocation2] sm:$0xff] %vm277_vm1, %v272_v54  ;;  %v371_v55 = vpop.permute.xlu2 %370 }
  0xad   : > { %293 = vst.msk [vmem:[#allocation2] sm:$0xff] %vm292_vm2, %v287_v53 }
  0xae   : > { %308 = vst.msk [vmem:[#allocation2] sm:$0xff] %vm307_vm3, %v302_v41 }
  0xaf   : > { %376 = vst.msk [vmem:[#allocation2 + $0x10] sm:$0xff] %vm277_vm1, %v371_v55 }
  0xb3   : > { %v289_v56 = vpop.permute.xlu1 %288  ;;  %v274_v57 = vpop.permute.xlu0 %273 }
  0xb4   : > { %279 = vst.msk [vmem:[#allocation2 + $0x20] sm:$0xff] %vm277_vm1, %v274_v57  ;;  %v421_v58 = vpop.permute.xlu2 %420 }
  0xb5   : > { %294 = vst.msk [vmem:[#allocation2 + $0x20] sm:$0xff] %vm292_vm2, %v289_v56 }
  0xb6   : > { %309 = vst.msk [vmem:[#allocation2 + $0x20] sm:$0xff] %vm307_vm3, %v304_v45 }
  0xb7   : > { %425 = vst.msk [vmem:[#allocation2 + $0x38] sm:$0xff] %vm277_vm1, %v421_v58 }
  0xbb   : > { %v325_v59 = vpop.permute.xlu1 %324  ;;  %v323_v60 = vpop.permute.xlu0 %322 }
  0xbc   : > { %329 = vst.msk [vmem:[#allocation2 + $0x28] sm:$0xff] %vm277_vm1, %v325_v59  ;;  %v433_v63 = vpop.permute.xlu2 %432 }
  0xbd   : > { %328 = vst.msk [vmem:[#allocation2 + $0x8] sm:$0xff] %vm277_vm1, %v323_v60 }
  0xbe   : > { %342 = vst.msk [vmem:[#allocation2 + $0x8] sm:$0xff] %vm292_vm2, %v337_v49 }
  0xc3   : > { %v351_v61 = vpop.permute.xlu1 %350  ;;  %v339_v62 = vpop.permute.xlu0 %338 }
  0xc4   : > { %356 = vst.msk [vmem:[#allocation2 + $0x8] sm:$0xff] %vm307_vm3, %v351_v61  ;;  %v399_v2 = vpop.permute.xlu2 %398 }
  0xc5   : > { %343 = vst.msk [vmem:[#allocation2 + $0x28] sm:$0xff] %vm292_vm2, %v339_v62 }
  0xcb   : > { %v419_v0 = vpop.permute.xlu1 %418  ;;  %v373_v1 = vpop.permute.xlu0 %372 }
  0xcc   : > { %424 = vst.msk [vmem:[#allocation2 + $0x18] sm:$0xff] %vm277_vm1, %v419_v0  ;;  %v449_v6 = vpop.permute.xlu2 %448 }
  0xcd   : > { %377 = vst.msk [vmem:[#allocation2 + $0x30] sm:$0xff] %vm277_vm1, %v373_v1 }
  0xce   : > { %438 = vst.msk [vmem:[#allocation2 + $0x18] sm:$0xff] %vm292_vm2, %v433_v63 }
  0xd3   : > { %v387_v3 = vpop.permute.xlu1 %386  ;;  %v385_v4 = vpop.permute.xlu0 %384 }
  0xd4   : > { %391 = vst.msk [vmem:[#allocation2 + $0x30] sm:$0xff] %vm292_vm2, %v387_v3 }
  0xd5   : > { %390 = vst.msk [vmem:[#allocation2 + $0x10] sm:$0xff] %vm292_vm2, %v385_v4 }
  0xd6   : > { %404 = vst.msk [vmem:[#allocation2 + $0x10] sm:$0xff] %vm307_vm3, %v399_v2 }
  0xdb   : > { %v353_v5 = vpop.permute.xlu1 %352  ;;  %v435_v7 = vpop.permute.xlu0 %434 }
  0xdc   : > { %357 = vst.msk [vmem:[#allocation2 + $0x28] sm:$0xff] %vm307_vm3, %v353_v5 }
  0xdd   : > { %439 = vst.msk [vmem:[#allocation2 + $0x38] sm:$0xff] %vm292_vm2, %v435_v7 }
  0xde   : > { %453 = vst.msk [vmem:[#allocation2 + $0x38] sm:$0xff] %vm307_vm3, %v449_v6 }
  0xe3   : > { %v447_v8 = vpop.permute.xlu1 %446  ;;  %v401_v9 = vpop.permute.xlu0 %400 }
  0xe4   : > { %452 = vst.msk [vmem:[#allocation2 + $0x18] sm:$0xff] %vm307_vm3, %v447_v8 }
  0xe5   : > { %405 = vst.msk [vmem:[#allocation2 + $0x30] sm:$0xff] %vm307_vm3, %v401_v9 }
  0xe6 PF: > { %v454_v10 = vld [vmem:[%s1068_s22] sm:$0xff]  ;;  %v455_v12 = vld [vmem:[%s1068_s22 + $0x8] sm:$0xff]  ;;  %s634_s27 = sshll.u32 %s915_s15, 6  ;;  %v456_v15 = vld [vmem:[%s1068_s22 + $0x10] sm:$0xff]  ;;  %s502_s15 = sshll.u32 %s1074_s23, 4  ;;  %s503_s15 = int_to_ptr.vmem [resolvable:$true] %s502_s15 }
  0xe7   : > { %v462_v11 = vld [vmem:[#allocation2] sm:$0xff]  ;;  %v463_v14 = vld [vmem:[#allocation2 + $0x8] sm:$0xff]  ;;  %v464_v16 = vld [vmem:[#allocation2 + $0x10] sm:$0xff]  ;;  %s501_s30 = scalar_lea.hbm %s1228_s3, %s634_s27  ;;  %s487_s5 = scalar_lea.sflag [#allocation5], %s223_s9 }
  0xe8   : > { %v470_v13 = vadd.f32 %v462_v11, %v454_v10  ;;  %v471_v17 = vadd.f32 %v463_v14, %v455_v12  ;;  %v472_v18 = vadd.f32 %v464_v16, %v456_v15  ;;  %v457_v19 = vld [vmem:[%s1068_s22 + $0x18] sm:$0xff]  ;;  %v458_v21 = vld [vmem:[%s1068_s22 + $0x20] sm:$0xff]  ;;  %v459_v24 = vld [vmem:[%s1068_s22 + $0x28] sm:$0xff]  ;;  %s504_s4 = sshll.u32 %s501_s30, 4  ;;  %s853_s25 = scalar_lea.hbm %s1228_s3, 128  ;;  %s505_s4 = int_to_ptr.hbm [resolvable:$true] %s504_s4 }
  0xe9   : > { %v466_v23 = vld [vmem:[#allocation2 + $0x20] sm:$0xff]  ;;  %v467_v25 = vld [vmem:[#allocation2 + $0x28] sm:$0xff]  ;;  %v460_v28 = vld [vmem:[%s1068_s22 + $0x30] sm:$0xff]  ;;  %s847_s6 = sshra.s32 %s505_s4, 4  ;;  %s848_s6 = int_to_ptr.hbm [resolvable:$true] %s847_s6 }
  0xea   : > { %478 = vst [vmem:[%s1074_s23] sm:$0xff] %v470_v13  ;;  %v474_v26 = vadd.f32 %v466_v23, %v458_v21  ;;  %v475_v27 = vadd.f32 %v467_v25, %v459_v24  ;;  %v461_v30 = vld [vmem:[%s1068_s22 + $0x38] sm:$0xff]  ;;  %s849_s7 = scalar_lea.hbm %s848_s6, 64  ;;  %p854_p12 = scmp.lt.s32.totalorder %s848_s6, %s1228_s3 }
  0xeb   : > { %v465_v20 = vld [vmem:[#allocation2 + $0x18] sm:$0xff]  ;;  %479 = vst [vmem:[%s1074_s23 + $0x8] sm:$0xff] %v471_v17  ;;  %p850_p4 = scmp.ne.s32.totalorder %s848_s6, %s849_s7  ;;  %p855_p13 = scmp.lt.s32.totalorder %s853_s25, %s849_s7 }
  0xec   : > { %v473_v22 = vadd.f32 %v465_v20, %v457_v19  ;;  %v468_v29 = vld [vmem:[#allocation2 + $0x30] sm:$0xff]  ;;  %480 = vst [vmem:[%s1074_s23 + $0x10] sm:$0xff] %v472_v18  ;;  %v469_v32 = vld [vmem:[#allocation2 + $0x38] sm:$0xff] }
  0xed   : > { %v476_v31 = vadd.f32 %v468_v29, %v460_v28  ;;  %v477_v33 = vadd.f32 %v469_v32, %v461_v30  ;;  %482 = vst [vmem:[%s1074_s23 + $0x20] sm:$0xff] %v474_v26  ;;  %p851_p8 = pnand %p850_p4, %p1035_p7  ;;  %p856_p0 = por %p855_p13, %p854_p12 }
  0xee   : > { %481 = vst [vmem:[%s1074_s23 + $0x18] sm:$0xff] %v473_v22 }
  0xef   : > { %483 = vst [vmem:[%s1074_s23 + $0x28] sm:$0xff] %v475_v27  ;;  %p852_p10 = pneg %p851_p8 }
  0xf0   : > { %484 = vst [vmem:[%s1074_s23 + $0x30] sm:$0xff] %v476_v31 }
  0xf1   : > { %485 = vst [vmem:[%s1074_s23 + $0x38] sm:$0xff] %v477_v33  ;;  %p857_p3 = pnand %p856_p0, %p852_p10 }
  0xf3   : > { %860 = shalt.err (!%p857_p3)
}
  0xf4   : > { %s934_s9 = smov 512   ;;  %s935_s23 = smov 32  }
  0xf5   : > { %645 = dma.vmem_to_hbm [thread:$0]  (%p1035_p7), %s503_s15, 1024, %s505_s4, %s487_s5, %s934_s9, %s934_s9, %s935_s23  }
  0xf6 PF: > { %s519_s18 = sand.u32 1, %s903_s12   ;;  %p659_p5 = pnand %p618_p11, %p1001_p6 }
  0xf7   : > { %s520_s24 = scalar_lea.sflag [#allocation5], %s519_s18 }
  0xf8   : > { %p660_p9 = pneg %p659_p5 }
  0xfa   : > { %898 = dma.done.wait (%p660_p9), %s520_s24, 1024  }
  0xfb   : > { %900 = vsyncadd (%p660_p9), %s520_s24, 4294966272  ;;  %s18_s17 = sadd.s32 1, %s923_s17   ;;  %s1236_s12 = smov %s907_s13 }
  0xfc   : > { %p15_p2 = scmp.ge.s32.totalorder %s18_s17, 4   ;;  %s1237_s13 = smov %s911_s14 }
  0xfd   : > { %s1238_s14 = smov %s1045_s26  ;;  %s1239_s15 = smov %s919_s16 }
  0xfe   : > { %s1240_s16 = smov %s1242_s8  ;;  %17 = sbr.rel (!%p15_p2) target bundleno = 8 (0x8), region = 89 }
 0x103   :  { %526 = vsyncpa [#allocation4], 1 }
 0x104   :  { %528 = vsyncpa [#allocation4 + $0x1], 1 }
 0x105   :  { %529 = vsyncpa [#allocation7], 1 }
 0x106   :  { %530 = vsyncpa [#allocation5], 1 }
 0x107   :  { %532 = vsyncpa [#allocation5 + $0x1], 1 }

</bundles_post_ra>
